<compile_context>
chip_gen: v6e
topology: v6e:2x2x1
jax: 0.10.0
libtpu: 0.0.40
codegen_flags: <defaults>
</compile_context>

<pallas_src>
import math

import jax
import jax.numpy as jnp
from jax.experimental import pallas as pl
from jax.experimental.pallas import tpu as pltpu

LANE = 128
SUBLANE = 8
_VMEM_LIMIT_BYTES = 32 * 1024 * 1024  # explicit scoped-VMEM budget, safe on v5e/v6e/v7x


def _sublane_quantum(dtype) -> int:
    itemsize = jnp.dtype(dtype).itemsize
    return SUBLANE * max(1, 4 // max(itemsize, 1))  # 8 rows f32, 16 bf16, 32 int8/fp8


def _plan_row_tiling(rows: int, dim: int, dtype, target_block_bytes: int):
    """Lane-dense row folding + byte-budget row tiling.  No physical padding ever."""
    itemsize = jnp.dtype(dtype).itemsize
    sub = _sublane_quantum(dtype)

    # Generalized lane-dense fold: pack `fold` logical rows into one row whose width is a
    # multiple of 128 lanes -> unmasked 128-lane stores.  Only when no padding is needed.
    fold = math.lcm(dim, LANE) // dim
    if fold <= 1 or rows % fold != 0:
        fold = 1
    # Don't fold if even a minimal (sub-row) block of the folded width would blow the budget.
    if fold > 1 and dim * fold * itemsize * sub > target_block_bytes:
        fold = 1

    wr = rows // fold
    wd = dim * fold  # multiple of 128 when fold > 1 (or when dim % 128 == 0)

    # Row tile from a byte budget; the last dim is always the full extent so every block DMA
    # is one fully contiguous HBM transfer.
    tr = target_block_bytes // max(wd * itemsize, 1)
    tr = max(sub, (tr // sub) * sub)
    if tr >= wr:
        total_bytes = wr * wd * itemsize
        if total_bytes > (1 << 20) and wr >= 2 * sub:
            # Keep >= 2 row blocks so the "parallel" axis can shard across v7x's two
            # TensorCores and the software pipeline stays non-degenerate.
            half = (wr + 1) // 2
            tr = min(((half + sub - 1) // sub) * sub, wr)
        else:
            tr = wr  # full-extent row block (always legal)
    grid = (pl.cdiv(wr, tr),)
    return fold, wr, wd, tr, grid


def _layer_scale_kernel(x_ref, g_ref, o_ref):
    # x_ref: (tr, wd) in x.dtype, g_ref: (1, wd) float32.  Multiply in f32, cast on store.
    o_ref[...] = (x_ref[...].astype(jnp.float32) * g_ref[...]).astype(o_ref.dtype)


def _residual_layer_scale_kernel(x_ref, y_ref, g_ref, o_ref):
    # x + y * gamma, all in f32, single downcast on store.
    o_ref[...] = (
        x_ref[...].astype(jnp.float32) + y_ref[...].astype(jnp.float32) * g_ref[...]
    ).astype(o_ref.dtype)


def layer_scale(
    x: jax.Array,
    gamma: jax.Array,
    *,
    target_block_bytes: int = 4 * 1024 * 1024,
    donate_x: bool = False,
) -> jax.Array:
    """x * gamma, gamma of shape (dim,) broadcast over the last axis of x."""
    orig_shape = x.shape
    dim = int(orig_shape[-1])
    assert gamma.shape == (dim,), f"gamma shape {gamma.shape} != ({dim},)"
    if x.size == 0:  # empty-input guard
        return (x.astype(jnp.float32) * gamma.astype(jnp.float32)).astype(x.dtype)

    rows = x.size // dim
    fold, wr, wd, tr, grid = _plan_row_tiling(rows, dim, x.dtype, target_block_bytes)

    xw = x.reshape(wr, wd)
    gw = jnp.tile(gamma.astype(jnp.float32), fold).reshape(1, wd)

    out = pl.pallas_call(
        _layer_scale_kernel,
        out_shape=jax.ShapeDtypeStruct((wr, wd), x.dtype),
        grid_spec=pl.GridSpec(
            grid=grid,
            in_specs=[
                pl.BlockSpec((tr, wd), lambda i: (i, 0)),
                pl.BlockSpec((1, wd), lambda i: (0, 0)),
            ],
            out_specs=pl.BlockSpec((tr, wd), lambda i: (i, 0)),
        ),
        compiler_params=pltpu.CompilerParams(
            dimension_semantics=("parallel",),
            vmem_limit_bytes=_VMEM_LIMIT_BYTES,
        ),
        input_output_aliases=({0: 0} if donate_x else {}),
    )(xw, gw)
    return out.reshape(orig_shape)


def residual_layer_scale(
    x: jax.Array,
    y: jax.Array,
    gamma: jax.Array,
    *,
    target_block_bytes: int = 2 * 1024 * 1024,
    donate_x: bool = False,
) -> jax.Array:
    """Fused Block call site: x + y * gamma (one HBM pass instead of two)."""
    orig_shape = x.shape
    dim = int(orig_shape[-1])
    assert y.shape == x.shape
    assert gamma.shape == (dim,), f"gamma shape {gamma.shape} != ({dim},)"
    if x.size == 0:
        return (
            x.astype(jnp.float32) + y.astype(jnp.float32) * gamma.astype(jnp.float32)
        ).astype(x.dtype)

    rows = x.size // dim
    fold, wr, wd, tr, grid = _plan_row_tiling(rows, dim, x.dtype, target_block_bytes)

    xw = x.reshape(wr, wd)
    yw = y.reshape(wr, wd)
    gw = jnp.tile(gamma.astype(jnp.float32), fold).reshape(1, wd)

    out = pl.pallas_call(
        _residual_layer_scale_kernel,
        out_shape=jax.ShapeDtypeStruct((wr, wd), x.dtype),
        grid_spec=pl.GridSpec(
            grid=grid,
            in_specs=[
                pl.BlockSpec((tr, wd), lambda i: (i, 0)),
                pl.BlockSpec((tr, wd), lambda i: (i, 0)),
                pl.BlockSpec((1, wd), lambda i: (0, 0)),
            ],
            out_specs=pl.BlockSpec((tr, wd), lambda i: (i, 0)),
        ),
        compiler_params=pltpu.CompilerParams(
            dimension_semantics=("parallel",),
            vmem_limit_bytes=_VMEM_LIMIT_BYTES,
        ),
        input_output_aliases=({0: 0} if donate_x else {}),
    )(xw, yw, gw)
    return out.reshape(orig_shape)


if __name__ == "__main__":
    key = jax.random.PRNGKey(0)
    k1, k2, k3, k4, k5 = jax.random.split(key, 5)

    # Shapes consistent with the Encoder's LayerScale usage: (batch, tokens, embedding_size).
    batch, seq, hidden = 2, 8, 32
    init_values = 1e-5

    # nn.Parameter(init_values * torch.ones(dim)) equivalent.
    gamma = jnp.full((hidden,), init_values, dtype=jnp.float32)
    x = jax.random.normal(k1, (batch, seq, hidden), dtype=jnp.float32)

    # 1) Standalone LayerScale (folded path: dim=32 -> fold=4 -> wd=128 lane-dense).
    out = jax.block_until_ready(layer_scale(x, gamma))
    ref = x * gamma
    assert out.shape == x.shape and out.dtype == x.dtype
    assert jnp.allclose(out, ref, atol=1e-6, rtol=1e-6)

    # 2) Fused residual + LayerScale (the actual Block call site: x = x + ls(y)).
    y = jax.random.normal(k2, (batch, seq, hidden), dtype=jnp.float32)
    out_res = jax.block_until_ready(residual_layer_scale(x, y, gamma))
    assert jnp.allclose(out_res, x + y * gamma, atol=1e-6, rtol=1e-6)

    # 3) dim multiple of 128 with ragged row count (fold=1, full-extent row block).
    x2 = jax.random.normal(k3, (3, 13, 256), dtype=jnp.float32)
    gamma2 = jax.random.normal(k4, (256,), dtype=jnp.float32) * 1e-5
    out2 = jax.block_until_ready(layer_scale(x2, gamma2))
    assert jnp.allclose(out2, x2 * gamma2, atol=1e-6, rtol=1e-6)

    # 4) Non-divisor dim that still lane-folds via lcm (dim=48 -> fold=8 -> wd=384).
    x3 = jax.random.normal(k5, (2, 12, 48), dtype=jnp.float32)
    gamma3 = jnp.full((48,), init_values, dtype=jnp.float32)
    out3 = jax.block_until_ready(layer_scale(x3, gamma3))
    assert jnp.allclose(out3, x3 * gamma3, atol=1e-6, rtol=1e-6)

    # 5) Masked fallback: rows not divisible by fold and dim not a multiple of 128.
    x4 = jax.random.normal(k1, (5, 7, 40), dtype=jnp.float32)
    gamma4 = jnp.full((40,), init_values, dtype=jnp.float32)
    out4 = jax.block_until_ready(layer_scale(x4, gamma4))
    assert jnp.allclose(out4, x4 * gamma4, atol=1e-6, rtol=1e-6)

    # 6) bf16 activations with fp32 gamma (multiply in f32, single cast on store).
    x5 = x.astype(jnp.bfloat16)
    out5 = jax.block_until_ready(layer_scale(x5, gamma))
    ref5 = (x5.astype(jnp.float32) * gamma).astype(jnp.bfloat16)
    assert out5.dtype == jnp.bfloat16
    assert jnp.allclose(out5.astype(jnp.float32), ref5.astype(jnp.float32), rtol=2e-2, atol=1e-7)

    print("KERNEL_OK")
</pallas_src>

<mosaic_0001>
module attributes {stable_mosaic.version = 11 : i64} {
  func.func @_layer_scale_kernel(%arg0: i32, %arg1: memref<4x128xf32, #tpu.memory_space<vmem>>, %arg2: memref<1x128xf32, #tpu.memory_space<vmem>>, %arg3: memref<4x128xf32, #tpu.memory_space<vmem>>) attributes {dimension_semantics = [#tpu.dimension_semantics<parallel>], iteration_bounds = array<i64: 1>, scalar_prefetch = 0 : i64, scratch_operands = 0 : i64, tpu.core_type = #tpu.core_type<tc>, window_params = [{transform_indices = @transform_0, window_bounds = array<i64: 4, 128>}, {pipeline_mode = #tpu.pipeline_mode<synchronous>, transform_indices = @transform_1, window_bounds = array<i64: 1, 128>}, {transform_indices = @transform_2, window_bounds = array<i64: 4, 128>}]} {
    %c0 = arith.constant 0 : index
    %c0_0 = arith.constant 0 : index
    %0 = vector.load %arg1[%c0, %c0_0] : memref<4x128xf32, #tpu.memory_space<vmem>>, vector<4x128xf32>
    %c0_1 = arith.constant 0 : index
    %c0_2 = arith.constant 0 : index
    %1 = vector.load %arg2[%c0_1, %c0_2] : memref<1x128xf32, #tpu.memory_space<vmem>>, vector<1x128xf32>
    %2 = vector.broadcast %1 : vector<1x128xf32> to vector<4x128xf32>
    %3 = arith.mulf %0, %2 : vector<4x128xf32>
    %c0_3 = arith.constant 0 : index
    %c0_4 = arith.constant 0 : index
    %4 = vector.load %arg3[%c0_3, %c0_4] : memref<4x128xf32, #tpu.memory_space<vmem>>, vector<4x128xf32>
    tpu.vector_store %arg3[%c0_3, %c0_4], %3 {strides = array<i32>} : memref<4x128xf32, #tpu.memory_space<vmem>>, vector<4x128xf32>,
    return
  }
  func.func @transform_0(%arg0: i32) -> (i32, i32) {
    %c0_i32 = arith.constant 0 : i32
    %c0_i32_0 = arith.constant 0 : i32
    return %arg0, %c0_i32 : i32, i32
  }
  func.func @transform_1(%arg0: i32) -> (i32, i32) {
    %c0_i32 = arith.constant 0 : i32
    %c0_i32_0 = arith.constant 0 : i32
    %c0_i32_1 = arith.constant 0 : i32
    return %c0_i32, %c0_i32_0 : i32, i32
  }
  func.func @transform_2(%arg0: i32) -> (i32, i32) {
    %c0_i32 = arith.constant 0 : i32
    %c0_i32_0 = arith.constant 0 : i32
    return %arg0, %c0_i32 : i32, i32
  }
}

</mosaic_0001>

<bundles_post_ra>
// kernel: tpu_custom_call.1
= control target key start
LH: loop header
LB: loop body
LE: loop exit
PB: predicated region body
PF: predicated region fallthrough
CT: control target
= control target key end

     0   :  { %7 = vsyncpa [#allocation3], 0  ;;  %s122_s0 = inlined_call_operand.hbm [shape: f32[4,128], index: 0, kind: input, shape index: {}]   ;;  %s123_s1 = inlined_call_operand.vmem [shape: f32[1,128], index: 1, kind: input, shape index: {}]   ;;  %s124_s2 = inlined_call_operand.hbm [shape: f32[4,128], index: 2, kind: output, shape index: {}]  }
   0x1   :  { %8 = vsyncpa [#allocation4], 0  ;;  %s96_s9 = smov [#allocation2]  }
   0x2   :  { %s15_s10 = sshll.u32 %s96_s9, 4  ;;  %s16_s10 = int_to_ptr.vmem [resolvable:$true] %s15_s10 }
   0x3   :  { %s60_s11 = scalar_lea.vmem %s16_s10, 64  ;;  %p65_p1 = scmp.lt.s32.totalorder %s16_s10, %s16_s10 }
   0x4   :  { %p61_p0 = scmp.ne.s32.totalorder %s16_s10, %s60_s11  ;;  %p66_p2 = scmp.lt.s32.totalorder %s60_s11, %s60_s11 }
   0x6   :  { %p67_p3 = por %p66_p2, %p65_p1 }
   0x8   :  { %p68_p4 = pnand %p67_p3, %p61_p0 }
   0xa   :  { %71 = shalt.err (!%p68_p4)
}
   0xb   :  { %18 = dma.hbm_to_vmem [thread:$0]  %s122_s0, 64, %s16_s10, [#allocation3]  }
   0xc   :  { %92 = dma.done.wait [#allocation3], 64  }
   0xd   :  { %93 = vsyncadd [#allocation3], 4294967232  ;;  %s97_s14 = smov [#allocation5]   ;;  %v24_v0 = vld [vmem:[#allocation2] sm:$0xf] }
   0xe   :  { %s40_s15 = sshll.u32 %s97_s14, 4  ;;  %v49_v1 = vld [vmem:[%s123_s1] ss:$0 sm:$0xff]  ;;  %s41_s15 = int_to_ptr.vmem [resolvable:$true] %s40_s15 }
   0xf   :  { %v32_v2 = vmul.f32 %v49_v1, %v24_v0  ;;  %s72_s18 = scalar_lea.vmem %s41_s15, 64  ;;  %p77_p6 = scmp.lt.s32.totalorder %s41_s15, %s41_s15 }
  0x10   :  { %p73_p5 = scmp.ne.s32.totalorder %s41_s15, %s72_s18  ;;  %p78_p7 = scmp.lt.s32.totalorder %s72_s18, %s72_s18 }
  0x11   :  { %33 = vst [vmem:[#allocation5] sm:$0xf] %v32_v2 }
  0x12   :  { %p79_p8 = por %p78_p7, %p77_p6 }
  0x14   :  { %p80_p9 = pnand %p79_p8, %p73_p5 }
  0x16   :  { %83 = shalt.err (!%p80_p9)
}
  0x17   :  { %43 = dma.vmem_to_hbm [thread:$0]  %s41_s15, 64, %s124_s2, [#allocation4]  }
  0x18   :  { %94 = dma.done.wait [#allocation4], 64  }
  0x19   :  { %95 = vsyncadd [#allocation4], 4294967232 }
  0x1a   :  { %47 = vsyncpa [#allocation3], 1 }
  0x1b   :  { %48 = vsyncpa [#allocation4], 1 }

</bundles_post_ra>
